<compile_context>
chip_gen: v6e
topology: v6e:2x2x1
jax: 0.10.0
libtpu: 0.0.40
codegen_flags: <defaults>
</compile_context>

<pallas_src>
import functools

import jax
import jax.numpy as jnp
from jax import lax
from jax.experimental import pallas as pl
from jax.experimental.pallas import tpu as pltpu


def _round_up(v: int, m: int) -> int:
    return -(-int(v) // m) * m


# ----------------------------------------------------------------------------
# Pallas kernel: one block of GBg graph-groups (s graphs each) per grid step.
# ----------------------------------------------------------------------------
def _corr_adj_kernel(x_ref, adj_ref, *, threshold: float, n_nodes: int,
                     pack: int):
    # x_ref block:   (GBg, pack*N, F)
    # adj_ref block: (GBg, pack, N, N)
    x = x_ref[...].astype(jnp.float32)
    n = n_nodes

    # Row-wise Pearson normalization: corr = (c * rsqrt(sum c^2)) @ (...)^T.
    # rsqrt goes to the EUP slot; avoids the NxN divide and explicit std.T.
    mean = jnp.mean(x, axis=-1, keepdims=True)
    c = x - mean
    var = jnp.sum(c * c, axis=-1, keepdims=True)
    cn = c * lax.rsqrt(var)          # zero-variance rows -> NaN -> masked to 0

    # One Gram per group of `pack` graphs: (pack*N, F) x (F, pack*N) keeps the
    # MXU rows busy even when N << 128.  Cross-graph blocks are discarded.
    gram = jnp.einsum("gpf,gqf->gpq", cn, cn,
                      preferred_element_type=jnp.float32)

    # Single small (N, N) off-diagonal mask, broadcast over the batch
    # (replaces two block-sized int32 iotas).
    row = lax.broadcasted_iota(jnp.int32, (n, n), 0)
    col = lax.broadcasted_iota(jnp.int32, (n, n), 1)
    offdiag = (row != col)[None]     # (1, N, N)

    # Extract the `pack` diagonal NxN blocks; clip/zero-diag/threshold fused.
    for i in range(pack):            # static unroll; pack is small (<= 32)
        blk = gram[:, i * n:(i + 1) * n, i * n:(i + 1) * n]   # (GBg, N, N)
        blk = jnp.clip(blk, -1.0, 1.0)                        # torch.corrcoef clamps
        keep = offdiag & (jnp.abs(blk) >= threshold)
        adj_ref[:, i, :, :] = jnp.where(keep, blk, 0.0).astype(adj_ref.dtype)


# ----------------------------------------------------------------------------
# Wrapper: packing / block sizing / pallas_call
# ----------------------------------------------------------------------------
def correlation_adjacency(x_prepared: jax.Array, threshold: float,
                          graphs_per_block=None,
                          out_dtype=jnp.float32,
                          mxu_pack_width: int = 128) -> jax.Array:
    """x_prepared: (G, N, F) (any float dtype) -> thresholded adjacency (G, N, N)."""
    G, N, F = (int(d) for d in x_prepared.shape)
    in_bytes = jnp.dtype(x_prepared.dtype).itemsize
    out_bytes = jnp.dtype(out_dtype).itemsize

    # ---- MXU packing factor: s graphs side-by-side in one Gram -------------
    max_pack = max(1, min(mxu_pack_width // max(1, N), 32))
    if graphs_per_block is not None:
        max_pack = max(1, min(max_pack, int(graphs_per_block)))
    s = 1
    for cand in range(min(max_pack, G), 0, -1):
        if G % cand == 0:            # divisor of G => no input padding copy
            s = cand
            break
    Gq = G // s                      # number of graph groups
    pn = s * N                       # rows per group

    # Free (contiguous) reshape: group s graphs into one (s*N, F) slab.
    x_grouped = x_prepared.reshape(Gq, pn, F)

    # ---- VMEM-budget-driven block size --------------------------------------
    cap = 64 * 1024 * 1024           # v7x-safe fallback if the query fails
    try:
        cap = int(pltpu.get_tpu_info().vmem_capacity_bytes)
    except Exception:
        pass
    budget = max(4 << 20, int(cap * 0.40))   # ~51 MiB v5e/v6e, ~25 MiB v7x

    in_tile = _round_up(pn, 8) * _round_up(F, 128) * in_bytes
    f32_tile = _round_up(pn, 8) * _round_up(F, 128) * 4
    gram_tile = _round_up(pn, 8) * _round_up(pn, 128) * 4
    out_tile = s * _round_up(N, 8) * _round_up(N, 128) * out_bytes
    out_f32 = s * _round_up(N, 8) * _round_up(N, 128) * 4
    # 2x in/out = pipeline double buffers; ~3 input-sized f32 temporaries
    # (x, c, cn), the group Gram, ~2 block-sized f32 temporaries (blk, keep).
    per_group = 2 * in_tile + 2 * out_tile + 3 * f32_tile + gram_tile + 2 * out_f32

    gbg = max(1, int(budget // max(1, per_group)))
    gbg = min(gbg, Gq)
    if Gq >= 2:
        gbg = min(gbg, (Gq + 1) // 2)        # >=2 grid steps (pipeline + v7x 2 TCs)
    if graphs_per_block is not None:
        gbg = max(1, min(gbg, max(1, int(graphs_per_block) // s)))
    gbg = int(gbg)

    num_blocks = int(pl.cdiv(Gq, gbg))
    vmem_limit = int(min(int(cap * 0.9),
                         max(2 * budget, int(1.5 * per_group * gbg) + (4 << 20))))

    kernel = functools.partial(_corr_adj_kernel, threshold=float(threshold),
                               n_nodes=N, pack=s)
    adj = pl.pallas_call(
        kernel,
        out_shape=jax.ShapeDtypeStruct((Gq, s, N, N), out_dtype),
        grid_spec=pltpu.PrefetchScalarGridSpec(
            num_scalar_prefetch=0,
            grid=(num_blocks,),
            in_specs=[pl.BlockSpec((gbg, pn, F), lambda g: (g, 0, 0))],
            out_specs=pl.BlockSpec((gbg, s, N, N), lambda g: (g, 0, 0, 0)),
        ),
        compiler_params=pltpu.CompilerParams(
            dimension_semantics=("parallel",),
            vmem_limit_bytes=vmem_limit),
    )(x_grouped)
    # Free contiguous reshape back to one adjacency per graph.
    return adj.reshape(G, N, N)


# ----------------------------------------------------------------------------
# Glue reproducing BaseGraphBuilder.prepare_node_features (plain JAX)
# ----------------------------------------------------------------------------
def chunk_time_windows_as_node_feats(x, window_size, stride):
    # x: (B, T, N) -> (B, W, N, window_size); one gather + one transpose.
    B, T, N = x.shape
    W = (T - window_size) // stride + 1
    idx = (jnp.arange(W) * stride)[:, None] + jnp.arange(window_size)[None, :]
    win = jnp.take(x, idx, axis=1)               # (B, W, ws, N)
    return jnp.transpose(win, (0, 1, 3, 2))      # (B, W, N, ws)


def prepare_node_features(x, use_windows, window_size, stride):
    if use_windows:
        windows = chunk_time_windows_as_node_feats(x, window_size, stride)
        B, W, N, F = windows.shape
        return windows.reshape(B * W, N, F)
    else:
        # x: (B, F, N) -> (B, N, F)
        return jnp.transpose(x, (0, 2, 1))


class CorrelationGraphBuilder:
    """JAX/Pallas port. forward() returns (node_feats, dense_adjacency).

    node_feats: (G, N, F) ; dense_adjacency: (G, N, N).
    """
    # TODO(synk): dense_to_sparse + torch_geometric Data/Batch produce a
    # data-dependent number of edges; there is no static-shape Pallas
    # equivalent, so the dense thresholded adjacency is returned instead.

    def __init__(self, correlation_threshold, use_windows=False,
                 window_size=100, stride=50, graphs_per_block=None,
                 out_dtype=jnp.float32):
        self.correlation_threshold = correlation_threshold
        self.use_windows = use_windows
        self.window_size = window_size
        self.stride = stride
        self.graphs_per_block = graphs_per_block
        self.out_dtype = out_dtype

    def forward(self, x):
        x_prepared = prepare_node_features(
            x, self.use_windows, self.window_size, self.stride)
        adj = correlation_adjacency(x_prepared, self.correlation_threshold,
                                    graphs_per_block=self.graphs_per_block,
                                    out_dtype=self.out_dtype)
        return x_prepared, adj


# ----------------------------------------------------------------------------
# Reference (pure JAX) for correctness check
# ----------------------------------------------------------------------------
def _reference_adj(x_prepared, threshold):
    def one(nf):
        c = nf - nf.mean(axis=1, keepdims=True)
        cov = c @ c.T
        std = jnp.sqrt(jnp.sum(c * c, axis=1, keepdims=True))
        corr = jnp.clip(cov / (std * std.T), -1.0, 1.0)
        n = nf.shape[0]
        corr = corr * (1.0 - jnp.eye(n, dtype=corr.dtype))
        return jnp.where(jnp.abs(corr) >= threshold, corr, 0.0)
    return jax.vmap(one)(x_prepared.astype(jnp.float32))


if __name__ == "__main__":
    key = jax.random.PRNGKey(0)
    k1, k2, k3 = jax.random.split(key, 3)

    # ---- case 1: use_windows=False ; x is (B, F, N) ----
    B, F, N = 2, 32, 8
    x = jax.random.normal(k1, (B, F, N), dtype=jnp.float32)
    builder = CorrelationGraphBuilder(correlation_threshold=0.2,
                                      use_windows=False)
    node_feats, adj = builder.forward(x)
    adj = jax.block_until_ready(adj)
    ref = _reference_adj(node_feats, 0.2)
    assert adj.shape == (B, N, N)
    assert jnp.allclose(adj, ref, atol=1e-4), "mismatch (no windows)"

    # ---- case 2: use_windows=True ; x is (B, T, N) ----
    Bw, T, Nw = 2, 24, 8
    xw = jax.random.normal(k2, (Bw, T, Nw), dtype=jnp.float32)
    builder_w = CorrelationGraphBuilder(correlation_threshold=0.3,
                                        use_windows=True,
                                        window_size=8, stride=4)
    node_feats_w, adj_w = builder_w.forward(xw)
    adj_w = jax.block_until_ready(adj_w)
    W = (T - 8) // 4 + 1
    ref_w = _reference_adj(node_feats_w, 0.3)
    assert node_feats_w.shape == (Bw * W, Nw, 8)
    assert adj_w.shape == (Bw * W, Nw, Nw)
    assert jnp.allclose(adj_w, ref_w, atol=1e-4), "mismatch (windows)"

    # ---- case 3: small graphs_per_block -> multi-block grid + partial block ----
    adj_mb = correlation_adjacency(node_feats_w, 0.3, graphs_per_block=4)
    adj_mb = jax.block_until_ready(adj_mb)
    assert adj_mb.shape == (Bw * W, Nw, Nw)
    assert jnp.allclose(adj_mb, ref_w, atol=1e-4), "mismatch (multi-block)"

    # ---- case 4: prime G -> no packing (s=1) + partial last block ----
    xp = jax.random.normal(k3, (17, 8, 16), dtype=jnp.float32)
    adj_p = jax.block_until_ready(correlation_adjacency(xp, 0.25))
    ref_p = _reference_adj(xp, 0.25)
    assert adj_p.shape == (17, 8, 8)
    assert jnp.allclose(adj_p, ref_p, atol=1e-4), "mismatch (unpacked/partial)"

    # ---- case 5: native bf16 input DMA (cast happens in-kernel) ----
    nf_bf16 = node_feats.astype(jnp.bfloat16)
    adj_bf = jax.block_until_ready(correlation_adjacency(nf_bf16, 0.2))
    ref_bf = _reference_adj(nf_bf16, 0.2)
    assert jnp.allclose(adj_bf, ref_bf, atol=1e-3), "mismatch (bf16 input)"

    print("KERNEL_OK")
</pallas_src>

<mosaic_0001>
module attributes {stable_mosaic.version = 11 : i64} {
  func.func @_corr_adj_kernel(%arg0: i32, %arg1: memref<1x16x32xf32, #tpu.memory_space<vmem>>, %arg2: memref<1x2x8x8xf32, #tpu.memory_space<vmem>>) attributes {dimension_semantics = [#tpu.dimension_semantics<parallel>], iteration_bounds = array<i64: 1>, scalar_prefetch = 0 : i64, scratch_operands = 0 : i64, tpu.core_type = #tpu.core_type<tc>, window_params = [{transform_indices = @transform_0, window_bounds = array<i64: 1, 16, 32>}, {transform_indices = @transform_1, window_bounds = array<i64: 1, 2, 8, 8>}]} {
    %c0 = arith.constant 0 : index
    %c0_0 = arith.constant 0 : index
    %c0_1 = arith.constant 0 : index
    %0 = vector.load %arg1[%c0, %c0_0, %c0_1] : memref<1x16x32xf32, #tpu.memory_space<vmem>>, vector<1x16x32xf32>
    %cst = arith.constant dense<0.000000e+00> : vector<1x16xf32>
    %1 = vector.multi_reduction <add>, %0, %cst [2] : vector<1x16x32xf32> to vector<1x16xf32>
    %2 = vector.shape_cast %1 : vector<1x16xf32> to vector<1x16x1xf32>
    %cst_2 = arith.constant 3.200000e+01 : f32
    %3 = vector.broadcast %cst_2 : f32 to vector<1x16x1xf32>
    %4 = arith.divf %2, %3 : vector<1x16x1xf32>
    %5 = vector.broadcast %4 : vector<1x16x1xf32> to vector<1x16x32xf32>
    %6 = arith.subf %0, %5 : vector<1x16x32xf32>
    %7 = arith.mulf %6, %6 : vector<1x16x32xf32>
    %cst_3 = arith.constant dense<0.000000e+00> : vector<1x16xf32>
    %8 = vector.multi_reduction <add>, %7, %cst_3 [2] : vector<1x16x32xf32> to vector<1x16xf32>
    %9 = vector.shape_cast %8 : vector<1x16xf32> to vector<1x16x1xf32>
    %10 = math.rsqrt %9 : vector<1x16x1xf32>
    %11 = vector.broadcast %10 : vector<1x16x1xf32> to vector<1x16x32xf32>
    %12 = arith.mulf %6, %11 : vector<1x16x32xf32>
    "tpu.trace_start"() <{level = 10 : i32, message = "gpf,gqf->gpq"}> : () -> ()
    %cst_4 = arith.constant dense<0.000000e+00> : vector<1x16x16xf32>
    %13 = tpu.matmul %12, %12, %cst_4 {dimension_numbers = #tpu.dot_dimension_numbers<[2], [2], [1], [1], [0, 0, 0, 1, 1, 1], [0], [0]>} : vector<1x16x32xf32>, vector<1x16x32xf32>, vector<1x16x16xf32> -> vector<1x16x16xf32>
    "tpu.trace_stop"() : () -> ()
    %14 = tpu.iota {dimensions = array<i32: 0>} : vector<8x8xi32>
    %15 = tpu.iota {dimensions = array<i32: 1>} : vector<8x8xi32>
    %16 = arith.cmpi ne, %14, %15 : vector<8x8xi32>
    %17 = vector.shape_cast %16 : vector<8x8xi1> to vector<1x8x8xi1>
    %18 = vector.extract_strided_slice %13 {offsets = [0, 0, 0], sizes = [1, 8, 8], strides = [1, 1, 1]} : vector<1x16x16xf32> to vector<1x8x8xf32>
    %cst_5 = arith.constant -1.000000e+00 : f32
    %cst_6 = arith.constant 1.000000e+00 : f32
    %19 = vector.broadcast %cst_5 : f32 to vector<1x8x8xf32>
    %20 = arith.maximumf %19, %18 : vector<1x8x8xf32>
    %21 = vector.broadcast %cst_6 : f32 to vector<1x8x8xf32>
    %22 = arith.minimumf %21, %20 : vector<1x8x8xf32>
    %23 = math.absf %22 : vector<1x8x8xf32>
    %cst_7 = arith.constant 2.000000e-01 : f32
    %24 = vector.broadcast %cst_7 : f32 to vector<1x8x8xf32>
    %25 = arith.cmpf oge, %23, %24 : vector<1x8x8xf32>
    %26 = arith.andi %17, %25 : vector<1x8x8xi1>
    %cst_8 = arith.constant 0.000000e+00 : f32
    %27 = vector.broadcast %cst_8 : f32 to vector<1x8x8xf32>
    %28 = arith.select %26, %22, %27 : vector<1x8x8xi1>, vector<1x8x8xf32>
    %c0_9 = arith.constant 0 : index
    %c0_10 = arith.constant 0 : index
    %c0_11 = arith.constant 0 : index
    %c0_12 = arith.constant 0 : index
    %29 = vector.load %arg2[%c0_9, %c0_10, %c0_11, %c0_12] : memref<1x2x8x8xf32, #tpu.memory_space<vmem>>, vector<1x1x8x8xf32>
    %30 = vector.shape_cast %29 : vector<1x1x8x8xf32> to vector<1x8x8xf32>
    %31 = vector.shape_cast %28 : vector<1x8x8xf32> to vector<1x1x8x8xf32>
    tpu.vector_store %arg2[%c0_9, %c0_10, %c0_11, %c0_12], %31 {strides = array<i32>} : memref<1x2x8x8xf32, #tpu.memory_space<vmem>>, vector<1x1x8x8xf32>,
    %32 = vector.extract_strided_slice %13 {offsets = [0, 8, 8], sizes = [1, 8, 8], strides = [1, 1, 1]} : vector<1x16x16xf32> to vector<1x8x8xf32>
    %cst_13 = arith.constant -1.000000e+00 : f32
    %cst_14 = arith.constant 1.000000e+00 : f32
    %33 = vector.broadcast %cst_13 : f32 to vector<1x8x8xf32>
    %34 = arith.maximumf %33, %32 : vector<1x8x8xf32>
    %35 = vector.broadcast %cst_14 : f32 to vector<1x8x8xf32>
    %36 = arith.minimumf %35, %34 : vector<1x8x8xf32>
    %37 = math.absf %36 : vector<1x8x8xf32>
    %cst_15 = arith.constant 2.000000e-01 : f32
    %38 = vector.broadcast %cst_15 : f32 to vector<1x8x8xf32>
    %39 = arith.cmpf oge, %37, %38 : vector<1x8x8xf32>
    %40 = arith.andi %17, %39 : vector<1x8x8xi1>
    %cst_16 = arith.constant 0.000000e+00 : f32
    %41 = vector.broadcast %cst_16 : f32 to vector<1x8x8xf32>
    %42 = arith.select %40, %36, %41 : vector<1x8x8xi1>, vector<1x8x8xf32>
    %c0_17 = arith.constant 0 : index
    %c1 = arith.constant 1 : index
    %c0_18 = arith.constant 0 : index
    %c0_19 = arith.constant 0 : index
    %43 = vector.load %arg2[%c0_17, %c1, %c0_18, %c0_19] : memref<1x2x8x8xf32, #tpu.memory_space<vmem>>, vector<1x1x8x8xf32>
    %44 = vector.shape_cast %43 : vector<1x1x8x8xf32> to vector<1x8x8xf32>
    %45 = vector.shape_cast %42 : vector<1x8x8xf32> to vector<1x1x8x8xf32>
    tpu.vector_store %arg2[%c0_17, %c1, %c0_18, %c0_19], %45 {strides = array<i32>} : memref<1x2x8x8xf32, #tpu.memory_space<vmem>>, vector<1x1x8x8xf32>,
    return
  }
  func.func @transform_0(%arg0: i32) -> (i32, i32, i32) {
    %c0_i32 = arith.constant 0 : i32
    %c0_i32_0 = arith.constant 0 : i32
    %c0_i32_1 = arith.constant 0 : i32
    return %arg0, %c0_i32, %c0_i32_0 : i32, i32, i32
  }
  func.func @transform_1(%arg0: i32) -> (i32, i32, i32, i32) {
    %c0_i32 = arith.constant 0 : i32
    %c0_i32_0 = arith.constant 0 : i32
    %c0_i32_1 = arith.constant 0 : i32
    %c0_i32_2 = arith.constant 0 : i32
    return %arg0, %c0_i32, %c0_i32_0, %c0_i32_1 : i32, i32, i32, i32
  }
}

</mosaic_0001>

<bundles_post_ra>
// kernel: tpu_custom_call.1
= control target key start
LH: loop header
LB: loop body
LE: loop exit
PB: predicated region body
PF: predicated region fallthrough
CT: control target
= control target key end

     0   :  { %6 = vsyncpa [#allocation3], 0  ;;  %s287_s0 = inlined_call_operand.hbm [shape: f32[1,16,32], index: 0, kind: input, shape index: {}]   ;;  %s288_s1 = inlined_call_operand.hbm [shape: f32[1,2,8,8], index: 1, kind: output, shape index: {}]  }
   0x1   :  { %7 = vsyncpa [#allocation4], 0  ;;  %s247_s6 = smov [#allocation2]  }
   0x2   :  { %s13_s7 = sshll.u32 %s247_s6, 4  ;;  %s14_s7 = int_to_ptr.vmem [resolvable:$true] %s13_s7 }
   0x3   :  { %s211_s8 = scalar_lea.vmem %s14_s7, 256  ;;  %p216_p1 = scmp.lt.s32.totalorder %s14_s7, %s14_s7 }
   0x4   :  { %p212_p0 = scmp.ne.s32.totalorder %s14_s7, %s211_s8  ;;  %p217_p2 = scmp.lt.s32.totalorder %s211_s8, %s211_s8 }
   0x6   :  { %p218_p3 = por %p217_p2, %p216_p1 }
   0x8   :  { %p219_p4 = pnand %p218_p3, %p212_p0 }
   0xa   :  { %222 = shalt.err (!%p219_p4)
}
   0xb   :  { %s248_s9 = smov 128   ;;  %s249_s10 = smov 8  }
   0xc   :  { %19 = dma.hbm_to_vmem [thread:$0]  %s287_s0, 256, %s14_s7, [#allocation3], %s248_s9, %s248_s9, %s249_s10  }
   0xd   :  { %243 = dma.done.wait [#allocation3], 256  }
   0xe   :  { %244 = vsyncadd [#allocation3], 4294967040  ;;  %vm25_vm0 = vcmask 261120   ;;  %v24_v0 = vld [vmem:[#allocation2 + $0x8] sm:$0xff]  ;;  %v23_v1 = vld [vmem:[#allocation2] sm:$0xff]  ;;  %v130_v20 = vlaneseq  ;;  %s250_s0 = smov 120  }
   0xf   :  { %v29_v2 = vsel %vm25_vm0, %v24_v0, 0.0  ;;  %v26_v3 = vsel %vm25_vm0, %v23_v1, 0.0  ;;  %v251_v29 = vmov 0   ;;  %vm141_vm4 = vcmask 64512   ;;  %s252_s13 = smov [#allocation5]  }
  0x10   :  { %30 = vadd.xlane.f32.xlu0 %v29_v2  ;;  %v131_v23 = vshrl.u32 %v130_v20, 7  ;;  %v133_v24 = vand.u32 127, %v130_v20  ;;  %s164_s14 = sshll.u32 %s252_s13, 4  ;;  %s165_s14 = int_to_ptr.vmem [resolvable:$true] %s164_s14 }
  0x11   :  { %s223_s15 = scalar_lea.vmem %s165_s14, 256  ;;  %p228_p6 = scmp.lt.s32.totalorder %s165_s14, %s165_s14 }
  0x12   :  { %vm134_vm1 = vcmp.ne.s32.totalorder %v131_v23, %v133_v24  ;;  %p224_p5 = scmp.ne.s32.totalorder %s165_s14, %s223_s15  ;;  %p229_p7 = scmp.lt.s32.totalorder %s223_s15, %s223_s15 }
  0x14   :  { %27 = vadd.xlane.f32.xlu0 %v26_v3  ;;  %p230_p8 = por %p229_p7, %p228_p6 }
  0x16   :  { %p231_p9 = pnand %p230_p8, %p224_p5 }
  0x99   :  { %v31_v4 = vpop.xlane.xlu0 %30 }
  0x9a   :  { %v34_v5 = vmul.f32 0.03125, %v31_v4 }
  0x9c   :  { %v36_v6 = vsub.f32 %v24_v0, %v34_v5 }
  0x9d   :  { %v28_v7 = vpop.xlane.xlu0 %27 }
  0x9e   :  { %v33_v8 = vmul.f32 0.03125, %v28_v7  ;;  %v38_v9 = vmul.f32 %v36_v6, %v36_v6 }
  0xa0   :  { %v35_v10 = vsub.f32 %v23_v1, %v33_v8  ;;  %v42_v11 = vsel %vm25_vm0, %v38_v9, 0.0 }
  0xa1   :  { %43 = vadd.xlane.f32.xlu1 %v42_v11 }
  0xa2   :  { %v37_v12 = vmul.f32 %v35_v10, %v35_v10 }
  0xa4   :  { %v39_v13 = vsel %vm25_vm0, %v37_v12, 0.0 }
  0xa5   :  { %40 = vadd.xlane.f32.xlu1 %v39_v13 }
 0x12a   :  { %v44_v14 = vpop.xlane.xlu1 %43 }
 0x12b   :  { %199 = vrsqrt.f32 %v44_v14 }
 0x12e   :  { %v41_v15 = vpop.xlane.xlu1 %40 }
 0x12f   :  { %201 = vrsqrt.f32 %v41_v15 }
 0x138   :  { %v200_v16 = vpop.eup %199 }
 0x139   :  { %v48_v17 = vmul.f32 %v200_v16, %v36_v6 }
 0x13b   :  { %186 = vmatprep.subr.msk.mxu0 %vm25_vm0, %v48_v17 }
 0x13c   :  { %v202_v18 = vpop.eup %201  ;;  %187 = vmatpush3.xpose.msk.msra.mxu0 %vm25_vm0, %v48_v17 }
 0x13d   :  { %v47_v19 = vmul.f32 %v202_v18, %v35_v10 }
 0x13f   :  { %188 = vmatprep.subr.msk.mxu0 %vm25_vm0, %v47_v19  ;;  %190 = vmatprep.mubr.msk.f32.mxu0 %vm25_vm0, %v47_v19 }
 0x140   :  { %189 = vmatpush3.xpose.msk.msra.mxu0 %vm25_vm0, %v47_v19 }
 0x143   :  { %191 = vmatmul.mubr.msk.f32.vlgmr.msra.gmra.mxu0 %vm25_vm0, %v48_v17 }
 0x203   :  { %v192_v21 = vpop.f32.mrf.mxu0 }
 0x204   :  { %v181_v22 = vclamps-f32 %v192_v21, 1.0 }
 0x205   :  { %v121_v25 = vpop.f32.mrf.mxu0 }
 0x206   :  { %v145_v26 = vand.u32 2147483647, %v181_v22  ;;  %v180_v27 = vclamps-f32 %v121_v25, 1.0  ;;  %153 = vrot.lane.b32.xlu1 %v181_v22, %s250_s0 }
 0x208   :  { %v137_v28 = vand.u32 2147483647, %v180_v27  ;;  %vm146_vm2 = vcmp.ge.f32.partialorder %v145_v26, 0.2 }
 0x209   :  { %v147_v30 = vsel %vm146_vm2, 1, %v251_v29 }
 0x20a   :  { %vm138_vm3 = vcmp.ge.f32.partialorder %v137_v28, 0.2  ;;  %148 = vrot.lane.b32.xlu0 %v147_v30, %s250_s0 }
 0x20b   :  { %vm139_vm5 = vmand %vm134_vm1, %vm138_vm3 }
 0x20c   :  { %v140_v31 = vsel %vm139_vm5, %v180_v27, 0.0 }
 0x20d   :  { %142 = vst.msk [vmem:[#allocation5] sm:$0xff] %vm141_vm4, %v140_v31 }
 0x278   :  { %v154_v33 = vpop.permute.xlu1 %153 }
 0x27c   :  { %v149_v32 = vpop.permute.xlu0 %148 }
 0x27d   :  { %vm150_vm6 = vcmp.ne.s32.totalorder %v149_v32, 0 }
 0x27e   :  { %vm151_vm7 = vmand %vm134_vm1, %vm150_vm6 }
 0x27f   :  { %v156_v34 = vsel %vm151_vm7, %v154_v33, 0.0 }
 0x280   :  { %158 = vst.msk [vmem:[#allocation5 + $0x8] sm:$0xff] %vm141_vm4, %v156_v34 }
 0x281   :  { %234 = shalt.err (!%p231_p9)
}
 0x282   :  { %170 = dma.vmem_to_hbm [thread:$0]  %s165_s14, 256, %s288_s1, [#allocation4], %s248_s9, %s248_s9, %s249_s10  }
 0x283   :  { %245 = dma.done.wait [#allocation4], 256  }
 0x284   :  { %246 = vsyncadd [#allocation4], 4294967040 }
 0x285   :  { %174 = vsyncpa [#allocation3], 1 }
 0x286   :  { %175 = vsyncpa [#allocation4], 1 }

</bundles_post_ra>
